<compile_context>
chip_gen: v7x
topology: tpu7x:2x2x1
jax: 0.10.0
libtpu: 0.0.40
codegen_flags: <defaults>
</compile_context>

<pallas_src>
import functools

import numpy as np
import jax
import jax.numpy as jnp
from jax.experimental import pallas as pl
from jax.experimental.pallas import tpu as pltpu


def _bilinear_matrix_np(n_in: int, n_out: int) -> np.ndarray:
    """(n_out, n_in) interpolation matrix for mode='bilinear', align_corners=True."""
    m = np.zeros((n_out, n_in), np.float32)
    if n_out == 1:
        src = np.zeros((1,), np.float64)
    else:
        src = np.arange(n_out, dtype=np.float64) * (n_in - 1) / (n_out - 1)
    i0 = np.clip(np.floor(src).astype(np.int64), 0, n_in - 1)
    i1 = np.clip(i0 + 1, 0, n_in - 1)
    frac = (src - i0).astype(np.float32)
    rows = np.arange(n_out)
    np.add.at(m, (rows, i0), 1.0 - frac)
    np.add.at(m, (rows, i1), frac)
    return m


def _pick_bn(n: int, hout: int) -> int:
    """Batch block size: target >= 256 output rows per grid step; prefer a divisor
    of N (no batch zero-pad); fall back to padding only for awkward N."""
    target = max(1, -(-256 // hout))
    if n <= target:
        return n
    for d in range(target, min(n, 2 * target) + 1):
        if n % d == 0:
            return d
    if n <= 2 * target:
        return n
    return target  # no nearby divisor -> pad the batch (fallback)


def _upsample_conv_kernel(x_ref, whb_ref, g_ref, b_ref, o_ref, rows_ref, *, kpad):
    """x_ref:    (Bn*H,   Kpad)        bf16  -- Bn stacked flattened-NHWC inputs (lane-padded)
       whb_ref:  (3, Bn*Hout, Bn*H)    bf16  -- block-diag shifted row-interp matrices
       g_ref:    (3*Kpad, Nlan_pad)    bf16  -- fused upsample*conv tap matrices (K-concat)
       b_ref:    (1, Nlan_pad)         f32   -- bias broadcast row
       o_ref:    (Bn*Hout, Nlan_pad)         -- output slab
       rows_ref: (Bn*Hout, 3*Kpad)     bf16  -- scratch: concatenated row-interp slabs"""
    x = x_ref[...]
    # Row interpolation (+ H zero-pad via the shifted matrices): one dot per dh,
    # result written to a static 128-aligned lane offset of the scratch slab.
    for dh in range(3):
        rows_ref[:, dh * kpad:(dh + 1) * kpad] = jnp.dot(
            whb_ref[dh], x, preferred_element_type=jnp.float32
        ).astype(jnp.bfloat16)
    # Single fused tap matmul (K = 3*Kpad); bias folded in the epilogue.
    o_ref[...] = (
        b_ref[...]
        + jnp.dot(rows_ref[...], g_ref[...], preferred_element_type=jnp.float32)
    ).astype(o_ref.dtype)


def upsampling_block_forward(x_nchw, conv_w, conv_b, *,
                             out_dtype=jnp.float32, out_layout="NCHW"):
    """x_nchw: (N, Cin, H, W);  conv_w: (Cout, Cin, 3, 3);  conv_b: (Cout,)."""
    N, Cin, H, W = x_nchw.shape
    Cout = conv_w.shape[0]
    Hout, Wout = 2 * H, 2 * W
    Kraw = W * Cin
    Nlan = Wout * Cout
    Kpad = -(-Kraw // 128) * 128          # lane-pad K to full vregs / aligned stores
    Nlan_pad = -(-Nlan // 128) * 128      # lane-pad output -> unmasked stores

    Bn = _pick_bn(N, Hout)
    Npad = -(-N // Bn) * Bn

    # ---------------- glue: fused weights (trace-time, numpy) ----------------
    wh = _bilinear_matrix_np(H, Hout)                                  # (Hout, H)
    ww = _bilinear_matrix_np(W, Wout)                                  # (Wout, W)

    # Conv H-taps + H zero-padding folded into 3 shifted row-interp matrices,
    # expanded block-diagonally over the Bn images of a grid step.
    wh_shift = np.zeros((3, Hout, H), np.float32)
    for dh in range(3):
        lo, hi = max(0, 1 - dh), min(Hout, Hout + 1 - dh)
        wh_shift[dh, lo:hi, :] = wh[lo + dh - 1:hi + dh - 1, :]
    eye_bn = np.eye(Bn, dtype=np.float32)
    whb = np.stack([np.kron(eye_bn, wh_shift[dh]) for dh in range(3)])  # (3, Bn*Hout, Bn*H)

    # Width upsample folded into width-Toeplitz conv taps (width zero-pad included),
    # then the 3 dh tap matrices stacked along K -> one matmul in-kernel.
    mt = np.kron(ww, np.eye(Cin, dtype=np.float32)).T                  # (W*Cin, Wout*Cin)
    w_np = np.asarray(conv_w, np.float32)                              # (Cout, Cin, 3, 3)
    wm = np.zeros((3, Wout * Cin, Wout * Cout), np.float32)
    for dh in range(3):
        for dw in range(3):
            tap = w_np[:, :, dh, dw].T                                 # (Cin, Cout)
            for wo in range(Wout):
                wi = wo + dw - 1
                if 0 <= wi < Wout:
                    wm[dh, wi * Cin:(wi + 1) * Cin, wo * Cout:(wo + 1) * Cout] = tap
    g = np.einsum('ab,dbc->dac', mt, wm)                               # (3, Kraw, Nlan)
    g_cat = np.zeros((3, Kpad, Nlan_pad), np.float32)
    g_cat[:, :Kraw, :Nlan] = g
    g_cat = g_cat.reshape(3 * Kpad, Nlan_pad)

    b_row = np.zeros((1, Nlan_pad), np.float32)
    b_row[0, :Nlan] = np.tile(np.asarray(conv_b, np.float32), Wout)

    # ---------------- input: NCHW -> stacked flattened-NHWC slabs ----------------
    x_nhwc = jnp.transpose(x_nchw, (0, 2, 3, 1)).reshape(N, H, Kraw)
    if Kpad != Kraw:
        x_nhwc = jnp.pad(x_nhwc, ((0, 0), (0, 0), (0, Kpad - Kraw)))
    if Npad != N:   # fallback only (see _pick_bn): avoids the pad in the common case
        x_nhwc = jnp.pad(x_nhwc, ((0, Npad - N), (0, 0), (0, 0)))
    x_in = x_nhwc.reshape(Npad * H, Kpad).astype(jnp.bfloat16)

    whb_b = jnp.asarray(whb, jnp.bfloat16)
    g_b = jnp.asarray(g_cat, jnp.bfloat16)
    b_j = jnp.asarray(b_row, jnp.float32)

    kernel = functools.partial(_upsample_conv_kernel, kpad=Kpad)
    out_flat = pl.pallas_call(
        kernel,
        out_shape=jax.ShapeDtypeStruct((Npad * Hout, Nlan_pad), out_dtype),
        grid_spec=pltpu.PrefetchScalarGridSpec(
            num_scalar_prefetch=0,
            grid=(Npad // Bn,),
            in_specs=[
                pl.BlockSpec((Bn * H, Kpad), lambda n: (n, 0)),
                # constant operands (same block every grid step); for much larger
                # W/Cin/Cout single-buffer these (pl.Buffered(1)) and tile Nlan.
                pl.BlockSpec((3, Bn * Hout, Bn * H), lambda n: (0, 0, 0)),
                pl.BlockSpec((3 * Kpad, Nlan_pad), lambda n: (0, 0)),
                pl.BlockSpec((1, Nlan_pad), lambda n: (0, 0)),
            ],
            out_specs=pl.BlockSpec((Bn * Hout, Nlan_pad), lambda n: (n, 0)),
            scratch_shapes=[pltpu.VMEM((Bn * Hout, 3 * Kpad), jnp.bfloat16)],
        ),
        compiler_params=pltpu.CompilerParams(
            dimension_semantics=("parallel",),
            vmem_limit_bytes=32 * 1024 * 1024),
    )(x_in, whb_b, g_b, b_j)

    if Npad != N or Nlan_pad != Nlan:
        out_flat = out_flat[:N * Hout, :Nlan]
    out_nhwc = out_flat.reshape(N, Hout, Wout, Cout)
    if out_layout == "NHWC":
        return out_nhwc            # skips the extra HBM pass if the consumer allows
    return jnp.transpose(out_nhwc, (0, 3, 1, 2))   # NCHW to match PyTorch


def _reference_forward(x_nchw, conv_w, conv_b):
    """Pure-JAX reference: bilinear(align_corners=True, x2) then conv2d(3x3, pad=1)."""
    _, _, H, W = x_nchw.shape
    wh = jnp.asarray(_bilinear_matrix_np(H, 2 * H))
    ww = jnp.asarray(_bilinear_matrix_np(W, 2 * W))
    up = jnp.einsum('ph,nchw,qw->ncpq', wh, x_nchw, ww)
    out = jax.lax.conv_general_dilated(
        up, conv_w, window_strides=(1, 1), padding=((1, 1), (1, 1)),
        dimension_numbers=('NCHW', 'OIHW', 'NCHW'))
    return out + conv_b[None, :, None, None]


if __name__ == "__main__":
    N, Cin, Cout, H, W = 2, 4, 8, 16, 16
    key = jax.random.PRNGKey(0)
    kx, kw, kb = jax.random.split(key, 3)
    x = jax.random.normal(kx, (N, Cin, H, W), jnp.float32)
    # deterministic synthetic parameters for nn.Conv2d(Cin, Cout, 3, stride=1, padding=1, bias=True)
    conv_w = 0.1 * jax.random.normal(kw, (Cout, Cin, 3, 3), jnp.float32)
    conv_b = 0.1 * jax.random.normal(kb, (Cout,), jnp.float32)

    out = upsampling_block_forward(x, conv_w, conv_b)
    out = jax.block_until_ready(out)

    ref = _reference_forward(x, conv_w, conv_b)
    assert out.shape == (N, Cout, 2 * H, 2 * W), out.shape
    assert bool(jnp.allclose(out, ref, rtol=2e-2, atol=2e-2)), \
        float(jnp.max(jnp.abs(out - ref)))
    print("KERNEL_OK")
</pallas_src>

<mosaic_0001>
module attributes {stable_mosaic.version = 11 : i64} {
  func.func @_upsample_conv_kernel(%arg0: i32, %arg1: memref<32x128xbf16, #tpu.memory_space<vmem>>, %arg2: memref<3x64x32xbf16, #tpu.memory_space<vmem>>, %arg3: memref<384x256xbf16, #tpu.memory_space<vmem>>, %arg4: memref<1x256xf32, #tpu.memory_space<vmem>>, %arg5: memref<64x256xf32, #tpu.memory_space<vmem>>, %arg6: memref<64x384xbf16, #tpu.memory_space<vmem>>) attributes {dimension_semantics = [#tpu.dimension_semantics<parallel>], iteration_bounds = array<i64: 1>, scalar_prefetch = 0 : i64, scratch_operands = 1 : i64, tpu.core_type = #tpu.core_type<tc>, window_params = [{transform_indices = @transform_0, window_bounds = array<i64: 32, 128>}, {pipeline_mode = #tpu.pipeline_mode<synchronous>, transform_indices = @transform_1, window_bounds = array<i64: 3, 64, 32>}, {pipeline_mode = #tpu.pipeline_mode<synchronous>, transform_indices = @transform_2, window_bounds = array<i64: 384, 256>}, {pipeline_mode = #tpu.pipeline_mode<synchronous>, transform_indices = @transform_3, window_bounds = array<i64: 1, 256>}, {transform_indices = @transform_4, window_bounds = array<i64: 64, 256>}]} {
    %c0 = arith.constant 0 : index
    %c0_0 = arith.constant 0 : index
    %0 = vector.load %arg1[%c0, %c0_0] : memref<32x128xbf16, #tpu.memory_space<vmem>>, vector<32x128xbf16>
    %c0_1 = arith.constant 0 : index
    %c0_2 = arith.constant 0 : index
    %c0_3 = arith.constant 0 : index
    %1 = vector.load %arg2[%c0_1, %c0_2, %c0_3] : memref<3x64x32xbf16, #tpu.memory_space<vmem>>, vector<1x64x32xbf16>
    %2 = vector.shape_cast %1 : vector<1x64x32xbf16> to vector<64x32xbf16>
    %cst = arith.constant dense<0.000000e+00> : vector<64x128xf32>
    %3 = tpu.matmul %2, %0, %cst {dimension_numbers = #tpu.dot_dimension_numbers<[1], [0], [0], [1], [0, 0, 1, 1], [], []>} : vector<64x32xbf16>, vector<32x128xbf16>, vector<64x128xf32> -> vector<64x128xf32>
    %4 = arith.truncf %3 : vector<64x128xf32> to vector<64x128xbf16>
    %c0_4 = arith.constant 0 : index
    %c0_5 = arith.constant 0 : index
    %5 = vector.load %arg6[%c0_4, %c0_5] : memref<64x384xbf16, #tpu.memory_space<vmem>>, vector<64x128xbf16>
    tpu.vector_store %arg6[%c0_4, %c0_5], %4 {strides = array<i32>} : memref<64x384xbf16, #tpu.memory_space<vmem>>, vector<64x128xbf16>,
    %c1 = arith.constant 1 : index
    %c0_6 = arith.constant 0 : index
    %c0_7 = arith.constant 0 : index
    %6 = vector.load %arg2[%c1, %c0_6, %c0_7] : memref<3x64x32xbf16, #tpu.memory_space<vmem>>, vector<1x64x32xbf16>
    %7 = vector.shape_cast %6 : vector<1x64x32xbf16> to vector<64x32xbf16>
    %cst_8 = arith.constant dense<0.000000e+00> : vector<64x128xf32>
    %8 = tpu.matmul %7, %0, %cst_8 {dimension_numbers = #tpu.dot_dimension_numbers<[1], [0], [0], [1], [0, 0, 1, 1], [], []>} : vector<64x32xbf16>, vector<32x128xbf16>, vector<64x128xf32> -> vector<64x128xf32>
    %9 = arith.truncf %8 : vector<64x128xf32> to vector<64x128xbf16>
    %c0_9 = arith.constant 0 : index
    %c128 = arith.constant 128 : index
    %10 = vector.load %arg6[%c0_9, %c128] : memref<64x384xbf16, #tpu.memory_space<vmem>>, vector<64x128xbf16>
    tpu.vector_store %arg6[%c0_9, %c128], %9 {strides = array<i32>} : memref<64x384xbf16, #tpu.memory_space<vmem>>, vector<64x128xbf16>,
    %c2 = arith.constant 2 : index
    %c0_10 = arith.constant 0 : index
    %c0_11 = arith.constant 0 : index
    %11 = vector.load %arg2[%c2, %c0_10, %c0_11] : memref<3x64x32xbf16, #tpu.memory_space<vmem>>, vector<1x64x32xbf16>
    %12 = vector.shape_cast %11 : vector<1x64x32xbf16> to vector<64x32xbf16>
    %cst_12 = arith.constant dense<0.000000e+00> : vector<64x128xf32>
    %13 = tpu.matmul %12, %0, %cst_12 {dimension_numbers = #tpu.dot_dimension_numbers<[1], [0], [0], [1], [0, 0, 1, 1], [], []>} : vector<64x32xbf16>, vector<32x128xbf16>, vector<64x128xf32> -> vector<64x128xf32>
    %14 = arith.truncf %13 : vector<64x128xf32> to vector<64x128xbf16>
    %c0_13 = arith.constant 0 : index
    %c256 = arith.constant 256 : index
    %15 = vector.load %arg6[%c0_13, %c256] : memref<64x384xbf16, #tpu.memory_space<vmem>>, vector<64x128xbf16>
    tpu.vector_store %arg6[%c0_13, %c256], %14 {strides = array<i32>} : memref<64x384xbf16, #tpu.memory_space<vmem>>, vector<64x128xbf16>,
    %c0_14 = arith.constant 0 : index
    %c0_15 = arith.constant 0 : index
    %16 = vector.load %arg4[%c0_14, %c0_15] : memref<1x256xf32, #tpu.memory_space<vmem>>, vector<1x256xf32>
    %c0_16 = arith.constant 0 : index
    %c0_17 = arith.constant 0 : index
    %17 = vector.load %arg6[%c0_16, %c0_17] : memref<64x384xbf16, #tpu.memory_space<vmem>>, vector<64x384xbf16>
    %c0_18 = arith.constant 0 : index
    %c0_19 = arith.constant 0 : index
    %18 = vector.load %arg3[%c0_18, %c0_19] : memref<384x256xbf16, #tpu.memory_space<vmem>>, vector<384x256xbf16>
    %cst_20 = arith.constant dense<0.000000e+00> : vector<64x256xf32>
    %19 = tpu.matmul %17, %18, %cst_20 {dimension_numbers = #tpu.dot_dimension_numbers<[1], [0], [0], [1], [0, 0, 1, 1], [], []>} : vector<64x384xbf16>, vector<384x256xbf16>, vector<64x256xf32> -> vector<64x256xf32>
    %20 = vector.broadcast %16 : vector<1x256xf32> to vector<64x256xf32>
    %21 = arith.addf %20, %19 : vector<64x256xf32>
    %c0_21 = arith.constant 0 : index
    %c0_22 = arith.constant 0 : index
    %22 = vector.load %arg5[%c0_21, %c0_22] : memref<64x256xf32, #tpu.memory_space<vmem>>, vector<64x256xf32>
    tpu.vector_store %arg5[%c0_21, %c0_22], %21 {strides = array<i32>} : memref<64x256xf32, #tpu.memory_space<vmem>>, vector<64x256xf32>,
    return
  }
  func.func @transform_0(%arg0: i32) -> (i32, i32) {
    %c0_i32 = arith.constant 0 : i32
    %c0_i32_0 = arith.constant 0 : i32
    return %arg0, %c0_i32 : i32, i32
  }
  func.func @transform_1(%arg0: i32) -> (i32, i32, i32) {
    %c0_i32 = arith.constant 0 : i32
    %c0_i32_0 = arith.constant 0 : i32
    %c0_i32_1 = arith.constant 0 : i32
    %c0_i32_2 = arith.constant 0 : i32
    return %c0_i32, %c0_i32_0, %c0_i32_1 : i32, i32, i32
  }
  func.func @transform_2(%arg0: i32) -> (i32, i32) {
    %c0_i32 = arith.constant 0 : i32
    %c0_i32_0 = arith.constant 0 : i32
    %c0_i32_1 = arith.constant 0 : i32
    return %c0_i32, %c0_i32_0 : i32, i32
  }
  func.func @transform_3(%arg0: i32) -> (i32, i32) {
    %c0_i32 = arith.constant 0 : i32
    %c0_i32_0 = arith.constant 0 : i32
    %c0_i32_1 = arith.constant 0 : i32
    return %c0_i32, %c0_i32_0 : i32, i32
  }
  func.func @transform_4(%arg0: i32) -> (i32, i32) {
    %c0_i32 = arith.constant 0 : i32
    %c0_i32_0 = arith.constant 0 : i32
    return %arg0, %c0_i32 : i32, i32
  }
}

</mosaic_0001>

<bundles_post_ra>
// kernel: tpu_custom_call.1
= control target key start
LH: loop header
LB: loop body
LE: loop exit
PB: predicated region body
PF: predicated region fallthrough
CT: control target
= control target key end

     0   :  { %9 = vsyncpa [#allocation4], 0  ;;  %s1332_s0 = inlined_call_operand.vmem [shape: bf16[32,128], index: 0, kind: input, shape index: {}]   ;;  %s1333_s1 = inlined_call_operand.vmem [shape: bf16[3,64,32], index: 1, kind: input, shape index: {}]   ;;  %s1334_s2 = inlined_call_operand.hbm [shape: bf16[384,256], index: 2, kind: input, shape index: {}]   ;;  %s1335_s3 = inlined_call_operand.vmem [shape: f32[1,256], index: 3, kind: input, shape index: {}]   ;;  %s1336_s4 = inlined_call_operand.hbm [shape: f32[64,256], index: 4, kind: output, shape index: {}]  }
   0x1   :  { %10 = vsyncpa [#allocation5], 0  ;;  %s1199_s15 = smov [#allocation3]   ;;  %s1151_s19 = scalar_lea.hbm %s1334_s2, 6144 }
   0x2   :  { %s20_s16 = sshll.u32 %s1199_s15, 4  ;;  %p1152_p0 = scmp.ne.s32.totalorder %s1334_s2, %s1151_s19  ;;  %s21_s16 = int_to_ptr.vmem [resolvable:$true] %s20_s16 }
   0x3   :  { %p1155_p1 = scmp.lt.u32.totalorder %s1151_s19, %s1334_s2 }
   0x5   :  { %p1157_p2 = pnand %p1155_p1, %p1152_p0 }
   0x7   :  { %1160 = shalt.err (!%p1157_p2)
}
   0x8   :  { %s1161_s24 = scalar_lea.vmem %s21_s16, 6144  ;;  %p1166_p4 = scmp.lt.s32.totalorder %s21_s16, %s21_s16 }
   0x9   :  { %p1162_p3 = scmp.ne.s32.totalorder %s21_s16, %s1161_s24  ;;  %p1167_p5 = scmp.lt.s32.totalorder %s1161_s24, %s1161_s24 }
   0xb   :  { %p1168_p6 = por %p1167_p5, %p1166_p4 }
   0xd   :  { %p1169_p7 = pnand %p1168_p6, %p1162_p3 }
   0xf   :  { %1172 = shalt.err (!%p1169_p7)
}
  0x10   :  { %s1200_s25 = smov 128   ;;  %s1201_s26 = smov 8  }
  0x11   :  { %26 = dma.hbm_to_vmem [thread:$0]  %s1334_s2, 6144, %s21_s16, [#allocation4], %s1200_s25, %s1200_s25, %s1201_s26  }
  0x12   :  { %1195 = dma.done.wait [#allocation4], 6144  }
  0x13   :  { %1196 = vsyncadd [#allocation4], 4294961152  ;;  %v1065_v0 = vld [vmem:[%s1332_s0] sm:$0xff]   ;;  %v1066_v1 = vld [vmem:[%s1332_s0 + $0x8] sm:$0xff]   ;;  %vm77_vm0 = vcmask 261120   ;;  %v1202_v62 = vmov 0  }
  0x14   :  { %1006 = vmatprep.subr.bf16.mxu0 %v1065_v0  ;;  %1018 = vmatprep.subr.bf16.mxu1 %v1065_v0  ;;  %v1067_v2 = vld [vmem:[%s1333_s1] sm:$0xff]   ;;  %v1069_v4 = vld [vmem:[%s1333_s1 + $0x8] sm:$0xff]   ;;  %v1071_v6 = vld [vmem:[%s1333_s1 + $0x10] sm:$0xff]  }
  0x15   :  { %1007 = vmatpush3.bf16.msra.mxu0 %v1065_v0  ;;  %1019 = vmatpush3.bf16.msra.mxu1 %v1065_v0  ;;  %v1068_v3 = vld [vmem:[%s1333_s1 + $0x20] sm:$0xff]   ;;  %v1070_v5 = vld [vmem:[%s1333_s1 + $0x28] sm:$0xff]   ;;  %v1073_v7 = vld [vmem:[%s1333_s1 + $0x30] sm:$0xff]  }
  0x16   :  { %1008 = vmatprep.subr.bf16.mxu0 %v1066_v1  ;;  %1020 = vmatprep.subr.bf16.mxu1 %v1066_v1  ;;  %v1072_v8 = vld [vmem:[%s1333_s1 + $0x18] sm:$0xff]   ;;  %v1074_v9 = vld [vmem:[%s1333_s1 + $0x40] sm:$0xff]   ;;  %v1076_v16 = vld [vmem:[%s1333_s1 + $0x48] sm:$0xff]  }
  0x17   :  { %1010 = vmatprep.mubr.msk.bf16.mxu0 %vm77_vm0, %v1067_v2  ;;  %1022 = vmatprep.mubr.msk.bf16.mxu1 %vm77_vm0, %v1068_v3  ;;  %v1075_v10 = vld [vmem:[%s1333_s1 + $0x38] sm:$0xff]   ;;  %v1079_v11 = vld [vmem:[#allocation3] ss:$8 sps:$4 sm:$0xff]   ;;  %v1081_v12 = vld [vmem:[#allocation3 + $0x4] ss:$8 sps:$4 sm:$0xff]  }
  0x18   :  { %v1084_v13 = vld [vmem:[#allocation3 + $0x14] ss:$8 sps:$4 sm:$0xff]   ;;  %v1082_v14 = vld [vmem:[#allocation3 + $0x10] ss:$8 sps:$4 sm:$0xff]   ;;  %v1087_v15 = vld [vmem:[#allocation3 + $0x24] ss:$8 sps:$4 sm:$0xff]  }
  0x19   :  { %1009 = vmatpush3.bf16.msra.mxu0 %v1066_v1  ;;  %1021 = vmatpush3.bf16.msra.mxu1 %v1066_v1  ;;  %v1077_v17 = vld [vmem:[%s1333_s1 + $0x50] sm:$0xff]   ;;  %v1085_v18 = vld [vmem:[#allocation3 + $0x20] ss:$8 sps:$4 sm:$0xff]   ;;  %v1093_v21 = vld [vmem:[#allocation3 + $0x44] ss:$8 sps:$4 sm:$0xff]  }
  0x1a   :  { %1030 = vmatprep.subr.bf16.mxu0 %v1065_v0  ;;  %692 = vmatprep.subr.bf16.mxu1 %v1081_v12  ;;  %v1090_v19 = vld [vmem:[#allocation3 + $0x34] ss:$8 sps:$4 sm:$0xff]   ;;  %v1088_v20 = vld [vmem:[#allocation3 + $0x30] ss:$8 sps:$4 sm:$0xff]   ;;  %v1091_v23 = vld [vmem:[#allocation3 + $0x40] ss:$8 sps:$4 sm:$0xff]  }
  0x1b   :  { %v1078_v22 = vld [vmem:[%s1333_s1 + $0x58] sm:$0xff]   ;;  %v1115_v24 = vld [vmem:[#allocation3 + $0x100] ss:$8 sps:$4 sm:$0xff]   ;;  %v1117_v25 = vld [vmem:[#allocation3 + $0x104] ss:$8 sps:$4 sm:$0xff]  }
  0x1c   :  { %1011 = vmatmul.mubr.msk.bf16.vlgmr.msra.gmra.mrb[0].mxu0 %vm77_vm0, %v1069_v4  ;;  %1023 = vmatmul.mubr.msk.bf16.vlgmr.msra.gmra.mrb[0].mxu1 %vm77_vm0, %v1070_v5  ;;  %v1096_v26 = vld [vmem:[#allocation3 + $0x54] ss:$8 sps:$4 sm:$0xff]   ;;  %v1094_v28 = vld [vmem:[#allocation3 + $0x50] ss:$8 sps:$4 sm:$0xff]   ;;  %v1099_v30 = vld [vmem:[#allocation3 + $0x64] ss:$8 sps:$4 sm:$0xff]  }
  0x1d   :  { %1031 = vmatpush3.bf16.msra.mxu0 %v1065_v0  ;;  %1014 = vmatprep.mubr.msk.bf16.mxu0 %vm77_vm0, %v1071_v6  ;;  %v1123_v27 = vld [vmem:[#allocation3 + $0x114] ss:$8 sps:$4 sm:$0xff]   ;;  %v1121_v29 = vld [vmem:[#allocation3 + $0x110] ss:$8 sps:$4 sm:$0xff]   ;;  %v1129_v31 = vld [vmem:[#allocation3 + $0x124] ss:$8 sps:$4 sm:$0xff]  }
  0x1e   :  { %1032 = vmatprep.subr.bf16.mxu0 %v1066_v1  ;;  %1026 = vmatprep.mubr.msk.bf16.mxu1 %vm77_vm0, %v1073_v7  ;;  %v1097_v32 = vld [vmem:[#allocation3 + $0x60] ss:$8 sps:$4 sm:$0xff]   ;;  %v1102_v34 = vld [vmem:[#allocation3 + $0x74] ss:$8 sps:$4 sm:$0xff]   ;;  %v1100_v35 = vld [vmem:[#allocation3 + $0x70] ss:$8 sps:$4 sm:$0xff]  }
  0x1f   :  { %693 = vmatpush1.bf16.msra.mxu1 %v1079_v11  ;;  %v1127_v33 = vld [vmem:[#allocation3 + $0x120] ss:$8 sps:$4 sm:$0xff]   ;;  %v1105_v36 = vld [vmem:[#allocation3 + $0x84] ss:$8 sps:$4 sm:$0xff]   ;;  %v1108_v38 = vld [vmem:[#allocation3 + $0x94] ss:$8 sps:$4 sm:$0xff]  }
  0x20   :  { %694 = vmatprep.subr.bf16.mxu1 %v1084_v13  ;;  %v1103_v37 = vld [vmem:[#allocation3 + $0x80] ss:$8 sps:$4 sm:$0xff]   ;;  %v1106_v39 = vld [vmem:[#allocation3 + $0x90] ss:$8 sps:$4 sm:$0xff]   ;;  %v1111_v40 = vld [vmem:[#allocation3 + $0xa4] ss:$8 sps:$4 sm:$0xff]  }
  0x21   :  { %1033 = vmatpush3.bf16.msra.mxu0 %v1066_v1  ;;  %v1109_v41 = vld [vmem:[#allocation3 + $0xa0] ss:$8 sps:$4 sm:$0xff]   ;;  %v1114_v42 = vld [vmem:[#allocation3 + $0xb4] ss:$8 sps:$4 sm:$0xff]   ;;  %v1112_v43 = vld [vmem:[#allocation3 + $0xb0] ss:$8 sps:$4 sm:$0xff]  }
  0x22   :  { %765 = vmatprep.subr.bf16.mxu0 %v1117_v25  ;;  %v1120_v44 = vld [vmem:[#allocation3 + $0xc4] ss:$8 sps:$4 sm:$0xff]   ;;  %v1118_v45 = vld [vmem:[#allocation3 + $0xc0] ss:$8 sps:$4 sm:$0xff]   ;;  %v1126_v46 = vld [vmem:[#allocation3 + $0xd4] ss:$8 sps:$4 sm:$0xff]  }
  0x23   :  { %695 = vmatpush1.bf16.msra.mxu1 %v1082_v14  ;;  %v1124_v47 = vld [vmem:[#allocation3 + $0xd0] ss:$8 sps:$4 sm:$0xff]   ;;  %v1132_v48 = vld [vmem:[#allocation3 + $0xe4] ss:$8 sps:$4 sm:$0xff]   ;;  %v1130_v49 = vld [vmem:[#allocation3 + $0xe0] ss:$8 sps:$4 sm:$0xff]  }
  0x24   :  { %1015 = vmatmul.mubr.msk.bf16.gmra.mrb[4].mxu0 %vm77_vm0, %v1072_v8  ;;  %1027 = vmatmul.mubr.msk.bf16.gmra.mrb[4].mxu1 %vm77_vm0, %v1075_v10  ;;  %v1135_v50 = vld [vmem:[#allocation3 + $0x134] ss:$8 sps:$4 sm:$0xff]   ;;  %v1133_v51 = vld [vmem:[#allocation3 + $0x130] ss:$8 sps:$4 sm:$0xff]   ;;  %v1141_v54 = vld [vmem:[#allocation3 + $0x144] ss:$8 sps:$4 sm:$0xff]  }
  0x25   :  { %1034 = vmatprep.mubr.msk.bf16.mxu0 %vm77_vm0, %v1074_v9  ;;  %696 = vmatprep.subr.bf16.mxu1 %v1087_v15  ;;  %v1138_v52 = vld [vmem:[#allocation3 + $0xf4] ss:$8 sps:$4 sm:$0xff]   ;;  %v1136_v53 = vld [vmem:[#allocation3 + $0xf0] ss:$8 sps:$4 sm:$0xff]   ;;  %v1139_v55 = vld [vmem:[#allocation3 + $0x140] ss:$8 sps:$4 sm:$0xff]  }
  0x26   :  { %v1144_v56 = vld [vmem:[#allocation3 + $0x154] ss:$8 sps:$4 sm:$0xff]   ;;  %v1142_v57 = vld [vmem:[#allocation3 + $0x150] ss:$8 sps:$4 sm:$0xff]   ;;  %v1145_v58 = vld [vmem:[#allocation3 + $0x160] ss:$8 sps:$4 sm:$0xff]  }
  0x27   :  { %697 = vmatpush1.bf16.msra.mxu1 %v1085_v18  ;;  %v1147_v59 = vld [vmem:[#allocation3 + $0x164] ss:$8 sps:$4 sm:$0xff]   ;;  %v1150_v60 = vld [vmem:[#allocation3 + $0x174] ss:$8 sps:$4 sm:$0xff]   ;;  %v1148_v61 = vld [vmem:[#allocation3 + $0x170] ss:$8 sps:$4 sm:$0xff]  }
  0x28   :  { %698 = vmatprep.subr.bf16.mxu1 %v1090_v19 }
  0x2b   :  { %699 = vmatpush1.bf16.msra.mxu1 %v1088_v20 }
  0x2c   :  { %1035 = vmatmul.mubr.msk.bf16.vlgmr.msra.gmra.mrb[8].mxu0 %vm77_vm0, %v1076_v16  ;;  %700 = vmatprep.subr.bf16.mxu1 %v1093_v21 }
  0x2d   :  { %1038 = vmatprep.mubr.msk.bf16.mxu0 %vm77_vm0, %v1077_v17  ;;  %766 = vmatpush1.bf16.msra.mxu0 %v1115_v24 }
  0x2e   :  { %767 = vmatprep.subr.bf16.mxu0 %v1123_v27 }
  0x2f   :  { %701 = vmatpush1.bf16.msra.mxu1 %v1091_v23 }
  0x30   :  { %702 = vmatprep.subr.bf16.mxu1 %v1096_v26 }
  0x31   :  { %768 = vmatpush1.bf16.msra.mxu0 %v1121_v29 }
  0x32   :  { %769 = vmatprep.subr.bf16.mxu0 %v1129_v31 }
  0x33   :  { %703 = vmatpush1.bf16.msra.mxu1 %v1094_v28 }
  0x34   :  { %1039 = vmatmul.mubr.msk.bf16.gmra.mrb[12].mxu0 %vm77_vm0, %v1078_v22  ;;  %704 = vmatprep.subr.bf16.mxu1 %v1099_v30 }
  0x35   :  { %770 = vmatpush1.bf16.msra.mxu0 %v1127_v33  ;;  %797 = vmatprep.mubr.bf16.mxu0 %v1202_v62 }
  0x36   :  { %771 = vmatprep.subr.bf16.mxu0 %v1135_v50 }
  0x37   :  { %705 = vmatpush1.bf16.msra.mxu1 %v1097_v32 }
  0x38   :  { %706 = vmatprep.subr.bf16.mxu1 %v1102_v34 }
  0x39   :  { %772 = vmatpush1.bf16.msra.mxu0 %v1133_v51 }
  0x3a   :  { %773 = vmatprep.subr.bf16.mxu0 %v1141_v54 }
  0x3b   :  { %707 = vmatpush1.bf16.msra.mxu1 %v1100_v35 }
  0x3c   :  { %708 = vmatprep.subr.bf16.mxu1 %v1105_v36 }
  0x3d   :  { %774 = vmatpush1.bf16.msra.mxu0 %v1139_v55 }
  0x3e   :  { %775 = vmatprep.subr.bf16.mxu0 %v1144_v56 }
  0x3f   :  { %709 = vmatpush1.bf16.msra.mxu1 %v1103_v37 }
  0x40   :  { %710 = vmatprep.subr.bf16.mxu1 %v1108_v38  ;;  %v839_v38 = vlaneseq }
  0x41   :  { %776 = vmatpush1.bf16.msra.mxu0 %v1142_v57 }
  0x42   :  { %777 = vmatprep.subr.bf16.mxu0 %v1147_v59 }
  0x43   :  { %711 = vmatpush1.bf16.msra.mxu1 %v1106_v39 }
  0x44   :  { %712 = vmatprep.subr.bf16.mxu1 %v1111_v40  ;;  %v840_v40 = vshrl.u32 %v839_v38, 7 }
  0x45   :  { %778 = vmatpush1.bf16.msra.mxu0 %v1145_v58 }
  0x46   :  { %779 = vmatprep.subr.bf16.mxu0 %v1150_v60 }
  0x47   :  { %713 = vmatpush1.bf16.msra.mxu1 %v1109_v41 }
  0x48   :  { %714 = vmatprep.subr.bf16.mxu1 %v1114_v42 }
  0x49   :  { %780 = vmatpush1.bf16.msra.mxu0 %v1148_v61 }
  0x4b   :  { %715 = vmatpush1.bf16.msra.mxu1 %v1112_v43 }
  0x4c   :  { %716 = vmatprep.subr.bf16.mxu1 %v1120_v44  ;;  %v841_v44 = vsub.s32 0, %v840_v40 }
  0x4f   :  { %717 = vmatpush1.bf16.msra.mxu1 %v1118_v45 }
  0x50   :  { %718 = vmatprep.subr.bf16.mxu1 %v1126_v46  ;;  %v391_v46 = vld [vmem:[%s1335_s3] sm:$0x3]  ;;  %s1203_s3 = smov [#allocation6]  }
  0x51   :  { %s886_s30 = sshll.u32 %s1203_s3, 4  ;;  %s887_s30 = int_to_ptr.vmem [resolvable:$true] %s886_s30 }
  0x52   :  { %s1173_s5 = scalar_lea.vmem %s887_s30, 2048  ;;  %p1178_p9 = scmp.lt.s32.totalorder %s887_s30, %s887_s30 }
  0x53   :  { %719 = vmatpush1.bf16.msra.mxu1 %v1124_v47  ;;  %v845_v47 = vsub.s32 1, %v840_v40  ;;  %p1174_p8 = scmp.ne.s32.totalorder %s887_s30, %s1173_s5  ;;  %p1179_p10 = scmp.lt.s32.totalorder %s1173_s5, %s1173_s5 }
  0x54   :  { %720 = vmatprep.subr.bf16.mxu1 %v1132_v48  ;;  %v1300_v48 = vrot.slane %v391_v46, %v841_v44 }
  0x55   :  { %v1302_v50 = vrot.slane %v391_v46, %v845_v47  ;;  %p1180_p11 = por %p1179_p10, %p1178_p9 }
  0x57   :  { %721 = vmatpush1.bf16.msra.mxu1 %v1130_v49  ;;  %p1181_p12 = pnand %p1180_p11, %p1174_p8 }
  0x58   :  { %722 = vmatprep.subr.bf16.mxu1 %v1138_v52 }
  0x5b   :  { %723 = vmatpush1.bf16.msra.mxu1 %v1136_v53 }
  0xef   :  { %v1012_v63 = vpop.f32.mrb[0].mxu0  ;;  %v1024_v0 = vpop.f32.mrb[0].mxu1 }
  0xf0   :  { %v124_v1 = vpop.f32.mrb[1].mxu0  ;;  %v238_v2 = vpop.f32.mrb[1].mxu1 }
  0xf1   :  { %v1013_v3 = vpop.f32.mrb[2].mxu0  ;;  %v1025_v4 = vpop.f32.mrb[2].mxu1 }
  0xf2   :  { %v156_v5 = vpack.c.bf16 %v1013_v3, %v1012_v63  ;;  %v270_v6 = vpack.c.bf16 %v1025_v4, %v1024_v0  ;;  %v127_v7 = vpop.f32.mrb[3].mxu0  ;;  %v241_v8 = vpop.f32.mrb[3].mxu1 }
  0xf3   :  { %v155_v9 = vpack.c.bf16 %v127_v7, %v124_v1  ;;  %v269_v10 = vpack.c.bf16 %v241_v8, %v238_v2 }
  0xf5   :  { %724 = vmatprep.mubr.bf16.mxu1 %v269_v10 }
  0xf6   :  { %725 = vmatmul.mubr.bf16.vlgmr.msra.gmra.mrb[8].mxu1 %v155_v9 }
  0xf7   :  { %v1016_v11 = vpop.f32.mrb[4].mxu0  ;;  %734 = vmatprep.mubr.bf16.mxu1 %v270_v6  ;;  %v1028_v12 = vpop.f32.mrb[4].mxu1 }
  0xf8   :  { %v140_v13 = vpop.f32.mrb[5].mxu0  ;;  %v254_v14 = vpop.f32.mrb[5].mxu1 }
  0xf9   :  { %v1017_v15 = vpop.f32.mrb[6].mxu0  ;;  %v1029_v16 = vpop.f32.mrb[6].mxu1 }
  0xfa   :  { %v158_v17 = vpack.c.bf16 %v1017_v15, %v1016_v11  ;;  %v143_v18 = vpop.f32.mrb[7].mxu0  ;;  %v272_v19 = vpack.c.bf16 %v1029_v16, %v1028_v12  ;;  %v257_v20 = vpop.f32.mrb[7].mxu1 }
  0xfb   :  { %v157_v21 = vpack.c.bf16 %v143_v18, %v140_v13  ;;  %v271_v22 = vpack.c.bf16 %v257_v20, %v254_v14 }
  0xfe   :  { %735 = vmatmul.mubr.bf16.gmra.mrb[12].mxu1 %v156_v5 }
  0xff   :  { %v1036_v23 = vpop.f32.mrb[8].mxu0  ;;  %744 = vmatprep.mubr.bf16.mxu1 %v271_v22 }
 0x100   :  { %v352_v24 = vpop.f32.mrb[9].mxu0 }
 0x101   :  { %v1037_v25 = vpop.f32.mrb[10].mxu0 }
 0x102   :  { %v384_v26 = vpack.c.bf16 %v1037_v25, %v1036_v23  ;;  %v355_v27 = vpop.f32.mrb[11].mxu0 }
 0x103   :  { %v383_v28 = vpack.c.bf16 %v355_v27, %v352_v24 }
 0x105   :  { %798 = vmatmul.mubr.bf16.vlgmr.msra.gmra.mrb[16].mxu0 %v383_v28 }
 0x106   :  { %745 = vmatmul.mubr.bf16.gmra.mrb[16].mxu1 %v157_v21  ;;  %807 = vmatprep.mubr.bf16.mxu0 %v1202_v62 }
 0x107   :  { %v1040_v29 = vpop.f32.mrb[12].mxu0  ;;  %754 = vmatprep.mubr.bf16.mxu1 %v272_v19 }
 0x108   :  { %v368_v30 = vpop.f32.mrb[13].mxu0 }
 0x109   :  { %v1041_v31 = vpop.f32.mrb[14].mxu0 }
 0x10a   :  { %v386_v32 = vpack.c.bf16 %v1041_v31, %v1040_v29  ;;  %v371_v33 = vpop.f32.mrb[15].mxu0 }
 0x10b   :  { %v385_v34 = vpack.c.bf16 %v371_v33, %v368_v30 }
 0x10d   :  { %808 = vmatmul.mubr.bf16.gmra.mrb[20].mxu0 %v384_v26 }
 0x10e   :  { %755 = vmatmul.mubr.bf16.gmra.mrb[20].mxu1 %v158_v17  ;;  %817 = vmatprep.mubr.bf16.mxu0 %v1202_v62 }
 0x115   :  { %818 = vmatmul.mubr.bf16.gmra.mrb[24].mxu0 %v385_v34 }
 0x116   :  { %827 = vmatprep.mubr.bf16.mxu0 %v1202_v62 }
 0x11d   :  { %828 = vmatmul.mubr.bf16.gmra.mrb[28].mxu0 %v386_v32 }
 0x1c9   :  { %v726_v35 = vpop.f32.mrb[8].mxu1 }
 0x1ca   :  { %v728_v36 = vpop.f32.mrb[9].mxu1 }
 0x1cb   :  { %v730_v37 = vpop.f32.mrb[10].mxu1 }
 0x1cc   :  { %v732_v39 = vpop.f32.mrb[11].mxu1 }
 0x1d1   :  { %v736_v41 = vpop.f32.mrb[12].mxu1 }
 0x1d2   :  { %v738_v42 = vpop.f32.mrb[13].mxu1 }
 0x1d3   :  { %v740_v43 = vpop.f32.mrb[14].mxu1 }
 0x1d4   :  { %v742_v45 = vpop.f32.mrb[15].mxu1 }
 0x1d8   :  { %v799_v49 = vpop.f32.mrb[16].mxu0 }
 0x1d9   :  { %v800_v51 = vadd.f32 %v799_v49, %v726_v35  ;;  %v746_v52 = vpop.f32.mrb[16].mxu1  ;;  %v801_v53 = vpop.f32.mrb[17].mxu0 }
 0x1da   :  { %v802_v54 = vadd.f32 %v801_v53, %v728_v36  ;;  %v748_v55 = vpop.f32.mrb[17].mxu1  ;;  %v803_v56 = vpop.f32.mrb[18].mxu0 }
 0x1db   :  { %v849_v57 = vadd.f32 %v1300_v48, %v800_v51  ;;  %v804_v58 = vadd.f32 %v803_v56, %v730_v37  ;;  %v750_v59 = vpop.f32.mrb[18].mxu1  ;;  %v805_v60 = vpop.f32.mrb[19].mxu0 }
 0x1dc   :  { %v850_v61 = vadd.f32 %v1302_v50, %v802_v54  ;;  %v806_v62 = vadd.f32 %v805_v60, %v732_v39  ;;  %v752_v63 = vpop.f32.mrb[19].mxu1 }
 0x1dd   :  { %865 = vst [vmem:[#allocation6] sm:$0xff] %v849_v57  ;;  %v851_v0 = vadd.f32 %v1300_v48, %v804_v58 }
 0x1de   :  { %866 = vst [vmem:[#allocation6 + $0x8] sm:$0xff] %v850_v61  ;;  %v852_v1 = vadd.f32 %v1302_v50, %v806_v62 }
 0x1df   :  { %867 = vst [vmem:[#allocation6 + $0x10] sm:$0xff] %v851_v0 }
 0x1e0   :  { %868 = vst [vmem:[#allocation6 + $0x18] sm:$0xff] %v852_v1  ;;  %v809_v2 = vpop.f32.mrb[20].mxu0 }
 0x1e1   :  { %v810_v3 = vadd.f32 %v809_v2, %v736_v41  ;;  %v756_v4 = vpop.f32.mrb[20].mxu1  ;;  %v811_v5 = vpop.f32.mrb[21].mxu0 }
 0x1e2   :  { %v812_v6 = vadd.f32 %v811_v5, %v738_v42  ;;  %v758_v7 = vpop.f32.mrb[21].mxu1  ;;  %v813_v8 = vpop.f32.mrb[22].mxu0 }
 0x1e3   :  { %v853_v9 = vadd.f32 %v1300_v48, %v810_v3  ;;  %v814_v10 = vadd.f32 %v813_v8, %v740_v43  ;;  %v760_v11 = vpop.f32.mrb[22].mxu1  ;;  %v815_v12 = vpop.f32.mrb[23].mxu0 }
 0x1e4   :  { %v854_v13 = vadd.f32 %v1302_v50, %v812_v6  ;;  %v816_v14 = vadd.f32 %v815_v12, %v742_v45  ;;  %v762_v15 = vpop.f32.mrb[23].mxu1 }
 0x1e5   :  { %869 = vst [vmem:[#allocation6 + $0x20] sm:$0xff] %v853_v9  ;;  %v855_v16 = vadd.f32 %v1300_v48, %v814_v10 }
 0x1e6   :  { %870 = vst [vmem:[#allocation6 + $0x28] sm:$0xff] %v854_v13  ;;  %v856_v17 = vadd.f32 %v1302_v50, %v816_v14 }
 0x1e7   :  { %871 = vst [vmem:[#allocation6 + $0x30] sm:$0xff] %v855_v16 }
 0x1e8   :  { %872 = vst [vmem:[#allocation6 + $0x38] sm:$0xff] %v856_v17  ;;  %v819_v18 = vpop.f32.mrb[24].mxu0 }
 0x1e9   :  { %v820_v19 = vadd.f32 %v819_v18, %v746_v52  ;;  %v821_v20 = vpop.f32.mrb[25].mxu0 }
 0x1ea   :  { %v822_v21 = vadd.f32 %v821_v20, %v748_v55  ;;  %v823_v22 = vpop.f32.mrb[26].mxu0 }
 0x1eb   :  { %v857_v23 = vadd.f32 %v1300_v48, %v820_v19  ;;  %v824_v24 = vadd.f32 %v823_v22, %v750_v59  ;;  %v825_v25 = vpop.f32.mrb[27].mxu0 }
 0x1ec   :  { %v858_v26 = vadd.f32 %v1302_v50, %v822_v21  ;;  %v826_v27 = vadd.f32 %v825_v25, %v752_v63 }
 0x1ed   :  { %873 = vst [vmem:[#allocation6 + $0x40] sm:$0xff] %v857_v23  ;;  %v859_v28 = vadd.f32 %v1300_v48, %v824_v24 }
 0x1ee   :  { %874 = vst [vmem:[#allocation6 + $0x48] sm:$0xff] %v858_v26  ;;  %v860_v29 = vadd.f32 %v1302_v50, %v826_v27 }
 0x1ef   :  { %875 = vst [vmem:[#allocation6 + $0x50] sm:$0xff] %v859_v28 }
 0x1f0   :  { %876 = vst [vmem:[#allocation6 + $0x58] sm:$0xff] %v860_v29  ;;  %v829_v30 = vpop.f32.mrb[28].mxu0 }
 0x1f1   :  { %v830_v31 = vadd.f32 %v829_v30, %v756_v4  ;;  %v831_v32 = vpop.f32.mrb[29].mxu0 }
 0x1f2   :  { %v832_v33 = vadd.f32 %v831_v32, %v758_v7  ;;  %v833_v34 = vpop.f32.mrb[30].mxu0 }
 0x1f3   :  { %v861_v35 = vadd.f32 %v1300_v48, %v830_v31  ;;  %v834_v36 = vadd.f32 %v833_v34, %v760_v11  ;;  %v835_v37 = vpop.f32.mrb[31].mxu0 }
 0x1f4   :  { %v862_v38 = vadd.f32 %v1302_v50, %v832_v33  ;;  %v836_v39 = vadd.f32 %v835_v37, %v762_v15 }
 0x1f5   :  { %877 = vst [vmem:[#allocation6 + $0x60] sm:$0xff] %v861_v35  ;;  %v863_v40 = vadd.f32 %v1300_v48, %v834_v36 }
 0x1f6   :  { %878 = vst [vmem:[#allocation6 + $0x68] sm:$0xff] %v862_v38  ;;  %v864_v41 = vadd.f32 %v1302_v50, %v836_v39 }
 0x1f7   :  { %879 = vst [vmem:[#allocation6 + $0x70] sm:$0xff] %v863_v40 }
 0x1f8   :  { %880 = vst [vmem:[#allocation6 + $0x78] sm:$0xff] %v864_v41 }
 0x1f9   :  { %1184 = shalt.err (!%p1181_p12)
}
 0x1fa   :  { %s1185_s8 = scalar_lea.hbm %s1336_s4, 2048 }
 0x1fb   :  { %p1186_p13 = scmp.ne.s32.totalorder %s1336_s4, %s1185_s8  ;;  %p1189_p0 = scmp.lt.u32.totalorder %s1185_s8, %s1336_s4 }
 0x1fd   :  { %p1191_p1 = pnand %p1189_p0, %p1186_p13 }
 0x1ff   :  { %1194 = shalt.err (!%p1191_p1)
}
 0x200   :  { %s1204_s11 = smov 256   ;;  %s1205_s12 = smov 16  }
 0x201   :  { %892 = dma.vmem_to_hbm [thread:$0]  %s887_s30, 2048, %s1336_s4, [#allocation5], %s1204_s11, %s1204_s11, %s1205_s12  }
 0x202   :  { %1197 = dma.done.wait [#allocation5], 2048  }
 0x203   :  { %1198 = vsyncadd [#allocation5], 4294965248 }
 0x204   :  { %896 = vsyncpa [#allocation4], 1 }
 0x205   :  { %897 = vsyncpa [#allocation5], 1 }

</bundles_post_ra>
